<compile_context>
chip_gen: v6e
topology: v6e:2x2x1
jax: 0.10.0
libtpu: 0.0.40
codegen_flags: <defaults>
</compile_context>

<pallas_src>
import math

import jax
import jax.numpy as jnp
from jax.experimental import pallas as pl
from jax.experimental.pallas import tpu as pltpu


# ----------------------------- slab layout constants -----------------------------

TB = 128          # batch tile (multiple of 8 sublanes; 128 rows fill v5e MXU M)
LANES = 128       # padded feature width for every layer

W1_OFF = 0        # rows [0:10]    : w1 (10 -> 128)
W2_OFF = 16       # rows [16:144]  : w2 (128 -> 84), cols 84:128 zero
W3_OFF = 144      # rows [144:228] : w3 (84 -> 10),  cols 10:128 zero (rows 228:272 zero)
B1_ROW = 272      # row 272        : b1 (128)
B2_ROW = 273      # row 273        : b2 (84), cols 84:128 zero
B3_ROW = 274      # row 274        : b3 (10), cols 10:128 zero
SLAB_ROWS = 280   # multiple of 8 sublanes

D_IN, D_H1, D_H2, D_OUT = 10, 128, 84, 10


# ----------------------------- Pallas kernel -----------------------------

def mlp_kernel(x_ref, slab_ref, o_ref):
    """Fused fc1+ReLU -> fc2+ReLU -> fc3 on one (TB, 10) batch tile.

    All intermediates stay in vregs; the weight slab is a single VMEM-resident
    block sliced with static (zero-cost) views.
    """
    x = x_ref[...]                                                   # (TB, 10)

    w1 = slab_ref[W1_OFF:W1_OFF + D_IN, :]                           # (10, 128)
    b1 = slab_ref[B1_ROW:B1_ROW + 1, :]                              # (1, 128)
    h = jnp.dot(x, w1, preferred_element_type=jnp.float32)           # (TB, 128)
    h = jnp.maximum(h + b1, 0.0)

    w2 = slab_ref[W2_OFF:W2_OFF + D_H1, :]                           # (128, 128)
    b2 = slab_ref[B2_ROW:B2_ROW + 1, :]                              # (1, 128)
    h = jnp.dot(h, w2, preferred_element_type=jnp.float32)           # (TB, 128)
    h = jnp.maximum(h + b2, 0.0)                                     # cols 84: are 0

    w3 = slab_ref[W3_OFF:W3_OFF + LANES, :]                          # (128, 128)
    b3 = slab_ref[B3_ROW:B3_ROW + 1, :]                              # (1, 128)
    y = jnp.dot(h, w3, preferred_element_type=jnp.float32) + b3      # (TB, 128)

    o_ref[...] = y.astype(o_ref.dtype)                               # lane-dense store


# ----------------------------- wrapper -----------------------------

@jax.jit
def mlp_forward(x, slab):
    """x: (B, 10) float32 -> (B, 10) logits.  Single pallas_call with a batch grid."""
    B = x.shape[0]
    Bp = pl.cdiv(B, TB) * TB
    if Bp != B:                                   # static (shape-derived) padding
        x = jnp.pad(x, ((0, Bp - B), (0, 0)))

    flops = 2 * Bp * (D_IN * LANES + LANES * LANES + LANES * LANES)
    bytes_accessed = (Bp * D_IN + SLAB_ROWS * LANES + Bp * LANES) * 4

    out = pl.pallas_call(
        mlp_kernel,
        out_shape=jax.ShapeDtypeStruct((Bp, LANES), jnp.float32),
        grid=(Bp // TB,),
        in_specs=[
            pl.BlockSpec((TB, D_IN), lambda i: (i, 0)),              # batch tile of x
            pl.BlockSpec((SLAB_ROWS, LANES), lambda i: (0, 0)),      # resident weight slab
        ],
        out_specs=pl.BlockSpec((TB, LANES), lambda i: (i, 0)),
        compiler_params=pltpu.CompilerParams(
            dimension_semantics=("parallel",),                        # v7x: 2 TCs share batch
            vmem_limit_bytes=16 * 1024 * 1024,
        ),
        cost_estimate=pl.CostEstimate(
            flops=flops, transcendentals=0, bytes_accessed=bytes_accessed),
    )(x, slab)

    # Padded logit columns [10:128] are exactly zero by construction; drop them
    # (never feed them to a downstream softmax).
    return out[:B, :D_OUT]


# ----------------------------- reference (pure JAX) -----------------------------

def ref_forward(x, p):
    h = jnp.maximum(x @ p["w1"] + p["b1"], 0.0)
    h = jnp.maximum(h @ p["w2"] + p["b2"], 0.0)
    return h @ p["w3"] + p["b3"]


# ----------------------------- deterministic params -----------------------------

def _uniform(key, shape, fan_in):
    # PyTorch nn.Linear default init: U(-1/sqrt(fan_in), 1/sqrt(fan_in))
    bound = 1.0 / math.sqrt(fan_in)
    return jax.random.uniform(key, shape, jnp.float32, -bound, bound)


def init_params(key):
    dims = [(D_IN, D_H1), (D_H1, D_H2), (D_H2, D_OUT)]
    params = {}
    for idx, (fan_in, fan_out) in enumerate(dims, start=1):
        key, kw, kb = jax.random.split(key, 3)
        params[f"w{idx}"] = _uniform(kw, (fan_in, fan_out), fan_in)   # (in, out)
        params[f"b{idx}"] = _uniform(kb, (fan_out,), fan_in)
    return params


def pack_params(p):
    """Pack all weights/biases into one zero-padded (280, 128) f32 slab."""
    slab = jnp.zeros((SLAB_ROWS, LANES), jnp.float32)
    slab = slab.at[W1_OFF:W1_OFF + D_IN, :D_H1].set(p["w1"])
    slab = slab.at[W2_OFF:W2_OFF + D_H1, :D_H2].set(p["w2"])
    slab = slab.at[W3_OFF:W3_OFF + D_H2, :D_OUT].set(p["w3"])
    slab = slab.at[B1_ROW, :D_H1].set(p["b1"])
    slab = slab.at[B2_ROW, :D_H2].set(p["b2"])
    slab = slab.at[B3_ROW, :D_OUT].set(p["b3"])
    # For v6e/v7x throughput: return slab.astype(jnp.bfloat16) (and cast x) —
    # accumulation stays f32 via preferred_element_type.
    return slab


# ----------------------------- main -----------------------------

if __name__ == "__main__":
    key = jax.random.PRNGKey(0)
    key, xkey = jax.random.split(key)
    params = init_params(key)
    slab = pack_params(params)

    B = 256                                    # 2 batch tiles -> exercises the grid
    x = jax.random.normal(xkey, (B, D_IN), jnp.float32)

    out = jax.block_until_ready(mlp_forward(x, slab))
    assert out.shape == (B, D_OUT), out.shape

    ref = ref_forward(x, params)
    err = float(jnp.max(jnp.abs(out - ref)))
    assert err < 1e-3, f"max abs error vs pure-JAX reference: {err}"

    print("KERNEL_OK")
</pallas_src>

<mosaic_0001>
module attributes {stable_mosaic.version = 11 : i64} {
  func.func @mlp_kernel(%arg0: i32, %arg1: memref<128x10xf32, #tpu.memory_space<vmem>>, %arg2: memref<280x128xf32, #tpu.memory_space<vmem>>, %arg3: memref<128x128xf32, #tpu.memory_space<vmem>>) attributes {dimension_semantics = [#tpu.dimension_semantics<parallel>], iteration_bounds = array<i64: 2>, scalar_prefetch = 0 : i64, scratch_operands = 0 : i64, tpu.core_type = #tpu.core_type<tc>, window_params = [{transform_indices = @transform_0, window_bounds = array<i64: 128, 10>}, {pipeline_mode = #tpu.pipeline_mode<synchronous>, transform_indices = @transform_1, window_bounds = array<i64: 280, 128>}, {transform_indices = @transform_2, window_bounds = array<i64: 128, 128>}]} {
    %c0 = arith.constant 0 : index
    %c0_0 = arith.constant 0 : index
    %0 = vector.load %arg1[%c0, %c0_0] : memref<128x10xf32, #tpu.memory_space<vmem>>, vector<128x10xf32>
    %c0_1 = arith.constant 0 : index
    %c0_2 = arith.constant 0 : index
    %1 = vector.load %arg2[%c0_1, %c0_2] : memref<280x128xf32, #tpu.memory_space<vmem>>, vector<10x128xf32>
    %c272 = arith.constant 272 : index
    %c0_3 = arith.constant 0 : index
    %2 = vector.load %arg2[%c272, %c0_3] : memref<280x128xf32, #tpu.memory_space<vmem>>, vector<1x128xf32>
    %cst = arith.constant dense<0.000000e+00> : vector<128x128xf32>
    %3 = tpu.matmul %0, %1, %cst {dimension_numbers = #tpu.dot_dimension_numbers<[1], [0], [0], [1], [0, 0, 1, 1], [], []>} : vector<128x10xf32>, vector<10x128xf32>, vector<128x128xf32> -> vector<128x128xf32>
    %4 = vector.broadcast %2 : vector<1x128xf32> to vector<128x128xf32>
    %5 = arith.addf %3, %4 : vector<128x128xf32>
    %cst_4 = arith.constant 0.000000e+00 : f32
    %6 = vector.broadcast %cst_4 : f32 to vector<128x128xf32>
    %7 = arith.maximumf %5, %6 : vector<128x128xf32>
    %c16 = arith.constant 16 : index
    %c0_5 = arith.constant 0 : index
    %8 = vector.load %arg2[%c16, %c0_5] : memref<280x128xf32, #tpu.memory_space<vmem>>, vector<128x128xf32>
    %c273 = arith.constant 273 : index
    %c0_6 = arith.constant 0 : index
    %9 = vector.load %arg2[%c273, %c0_6] : memref<280x128xf32, #tpu.memory_space<vmem>>, vector<1x128xf32>
    %cst_7 = arith.constant dense<0.000000e+00> : vector<128x128xf32>
    %10 = tpu.matmul %7, %8, %cst_7 {dimension_numbers = #tpu.dot_dimension_numbers<[1], [0], [0], [1], [0, 0, 1, 1], [], []>} : vector<128x128xf32>, vector<128x128xf32>, vector<128x128xf32> -> vector<128x128xf32>
    %11 = vector.broadcast %9 : vector<1x128xf32> to vector<128x128xf32>
    %12 = arith.addf %10, %11 : vector<128x128xf32>
    %cst_8 = arith.constant 0.000000e+00 : f32
    %13 = vector.broadcast %cst_8 : f32 to vector<128x128xf32>
    %14 = arith.maximumf %12, %13 : vector<128x128xf32>
    %c144 = arith.constant 144 : index
    %c0_9 = arith.constant 0 : index
    %15 = vector.load %arg2[%c144, %c0_9] : memref<280x128xf32, #tpu.memory_space<vmem>>, vector<128x128xf32>
    %c274 = arith.constant 274 : index
    %c0_10 = arith.constant 0 : index
    %16 = vector.load %arg2[%c274, %c0_10] : memref<280x128xf32, #tpu.memory_space<vmem>>, vector<1x128xf32>
    %cst_11 = arith.constant dense<0.000000e+00> : vector<128x128xf32>
    %17 = tpu.matmul %14, %15, %cst_11 {dimension_numbers = #tpu.dot_dimension_numbers<[1], [0], [0], [1], [0, 0, 1, 1], [], []>} : vector<128x128xf32>, vector<128x128xf32>, vector<128x128xf32> -> vector<128x128xf32>
    %18 = vector.broadcast %16 : vector<1x128xf32> to vector<128x128xf32>
    %19 = arith.addf %17, %18 : vector<128x128xf32>
    %c0_12 = arith.constant 0 : index
    %c0_13 = arith.constant 0 : index
    %20 = vector.load %arg3[%c0_12, %c0_13] : memref<128x128xf32, #tpu.memory_space<vmem>>, vector<128x128xf32>
    tpu.vector_store %arg3[%c0_12, %c0_13], %19 {strides = array<i32>} : memref<128x128xf32, #tpu.memory_space<vmem>>, vector<128x128xf32>,
    return
  }
  func.func @transform_0(%arg0: i32) -> (i32, i32) {
    %c0_i32 = arith.constant 0 : i32
    %c0_i32_0 = arith.constant 0 : i32
    return %arg0, %c0_i32 : i32, i32
  }
  func.func @transform_1(%arg0: i32) -> (i32, i32) {
    %c0_i32 = arith.constant 0 : i32
    %c0_i32_0 = arith.constant 0 : i32
    %c0_i32_1 = arith.constant 0 : i32
    return %c0_i32, %c0_i32_0 : i32, i32
  }
  func.func @transform_2(%arg0: i32) -> (i32, i32) {
    %c0_i32 = arith.constant 0 : i32
    %c0_i32_0 = arith.constant 0 : i32
    return %arg0, %c0_i32 : i32, i32
  }
}

</mosaic_0001>

<bundles_post_ra>
// kernel: mlp_forward.1
= control target key start
LH: loop header
LB: loop body
LE: loop exit
PB: predicated region body
PF: predicated region fallthrough
CT: control target
= control target key end

     0   :  { %s1088_s9 = smov 0   ;;  %s1275_s0 = inlined_call_operand.vmem [shape: f32[256,10], index: 0, kind: input, shape index: {}]   ;;  %s1276_s1 = inlined_call_operand.vmem [shape: f32[280,128], index: 1, kind: input, shape index: {}]   ;;  %s1277_s2 = inlined_call_operand.vmem [shape: f32[256,128], index: 2, kind: output, shape index: {}]  }
   0x1 LB: > { %s804_s10 = sadd.s32 4294967295, %s1071_s9   ;;  %p808_p0 = scmp.ge.s32.totalorder %s1071_s9, 1  ;;  %s1071_s9 = sphi %s1088_s9, %s12_s9  }
   0x2   : > { %p113_p1 = scmp.lt.s32.totalorder %s1071_s9, 3 }
   0x4   : > { %p114_p2 = pnand %p808_p0, %p113_p1 }
   0x5   : > { %s809_s15 = sshll.u32 (!%p114_p2), %s804_s10, 4 }
   0x6   : > { %117 = sbr.rel (%p114_p2) target bundleno = 643 (0x283), region = 28  ;;  %p136_p3 = scmp.lt.s32.totalorder (!%p114_p2), %s809_s15, 31 }
   0xb   : > { %v164_v0 = vld [vmem:[%s1276_s1 + $0x8] sm:$0x3]  ;;  %vm219_vm0 = vcmask 1041408   ;;  %v163_v1 = vld [vmem:[%s1276_s1] sm:$0xff]  ;;  %s1279_s15 = smov (!%p136_p3, %s809_s15), 31  ;;  %v397_v4 = vld [vmem:[%s1276_s1 + $0x78] sm:$0xff] }
   0xc   : > { %917 = vmatprep.subr.msk.mxu0 %vm219_vm0, %v164_v0  ;;  %v399_v2 = vld [vmem:[%s1276_s1 + $0x88] sm:$0xff]  ;;  %v398_v3 = vld [vmem:[%s1276_s1 + $0x80] sm:$0xff]  ;;  %s810_s22 = sshll.u32 %s1279_s15, 3  ;;  %vm170_vm1 = vcmask 80896   ;;  %v396_v5 = vld [vmem:[%s1276_s1 + $0x70] sm:$0xff] }
   0xd   : > { %918 = vmatpush3.msk.msra.mxu0 %vm219_vm0, %v164_v0  ;;  %945 = vmatprep.subr.mxu1 %v399_v2  ;;  %s1122_s27 = scalar_lea.vmem %s1275_s0, %s810_s22  ;;  %v395_v6 = vld [vmem:[%s1276_s1 + $0x68] sm:$0xff]  ;;  %v394_v10 = vld [vmem:[%s1276_s1 + $0x60] sm:$0xff]  ;;  %v393_v13 = vld [vmem:[%s1276_s1 + $0x58] sm:$0xff]  ;;  %s1254_s16 = scalar_lea.vmem %s1277_s2, %s810_s22 }
   0xe   : > { %919 = vmatprep.subr.mxu0 %v163_v1  ;;  %946 = vmatpush3.msra.mxu1 %v399_v2  ;;  %v147_v7 = vld [vmem:[%s1122_s27] sm:$0xff]  ;;  %v148_v8 = vld [vmem:[%s1122_s27 + $0x8] sm:$0xff]  ;;  %v149_v9 = vld [vmem:[%s1122_s27 + $0x10] sm:$0xff] }
   0xf   : > { %920 = vmatpush3.msra.mxu0 %v163_v1  ;;  %947 = vmatprep.subr.mxu1 %v398_v3  ;;  %v150_v11 = vld [vmem:[%s1122_s27 + $0x18] sm:$0xff]  ;;  %v151_v12 = vld [vmem:[%s1122_s27 + $0x20] sm:$0xff]  ;;  %v392_v14 = vld [vmem:[%s1276_s1 + $0x50] sm:$0xff] }
  0x10   : > { %948 = vmatpush3.msra.mxu1 %v398_v3  ;;  %921 = vmatprep.mubr.msk.f32.mxu0 %vm170_vm1, %v147_v7  ;;  %v152_v15 = vld [vmem:[%s1122_s27 + $0x28] sm:$0xff]  ;;  %v153_v16 = vld [vmem:[%s1122_s27 + $0x30] sm:$0xff]  ;;  %v390_v18 = vld [vmem:[%s1276_s1 + $0x40] sm:$0xff] }
  0x11   : > { %949 = vmatprep.subr.mxu1 %v397_v4  ;;  %922 = vmatmul.mubr.msk.f32.vlgmr.msra.gmra.mxu0 %vm170_vm1, %v148_v8  ;;  %v391_v17 = vld [vmem:[%s1276_s1 + $0x48] sm:$0xff]  ;;  %v154_v19 = vld [vmem:[%s1122_s27 + $0x38] sm:$0xff]  ;;  %v155_v20 = vld [vmem:[%s1122_s27 + $0x40] sm:$0xff] }
  0x12   : > { %950 = vmatpush3.msra.mxu1 %v397_v4  ;;  %924 = vmatprep.mubr.msk.f32.mxu0 %vm170_vm1, %v149_v9  ;;  %v389_v21 = vld [vmem:[%s1276_s1 + $0x38] sm:$0xff]  ;;  %v388_v22 = vld [vmem:[%s1276_s1 + $0x30] sm:$0xff]  ;;  %v156_v23 = vld [vmem:[%s1122_s27 + $0x48] sm:$0xff] }
  0x13   : > { %951 = vmatprep.subr.mxu1 %v396_v5  ;;  %v157_v24 = vld [vmem:[%s1122_s27 + $0x50] sm:$0xff]  ;;  %v158_v25 = vld [vmem:[%s1122_s27 + $0x58] sm:$0xff]  ;;  %v159_v26 = vld [vmem:[%s1122_s27 + $0x60] sm:$0xff] }
  0x14   : > { %952 = vmatpush3.msra.mxu1 %v396_v5  ;;  %v160_v27 = vld [vmem:[%s1122_s27 + $0x68] sm:$0xff]  ;;  %v161_v28 = vld [vmem:[%s1122_s27 + $0x70] sm:$0xff]  ;;  %v162_v29 = vld [vmem:[%s1122_s27 + $0x78] sm:$0xff] }
  0x15   : > { %953 = vmatprep.subr.mxu1 %v395_v6  ;;  %925 = vmatmul.mubr.msk.f32.gmra.mxu0 %vm170_vm1, %v150_v11  ;;  %v387_v30 = vld [vmem:[%s1276_s1 + $0x28] sm:$0xff]  ;;  %v386_v31 = vld [vmem:[%s1276_s1 + $0x20] sm:$0xff]  ;;  %v385_v32 = vld [vmem:[%s1276_s1 + $0x18] sm:$0xff] }
  0x16   : > { %954 = vmatpush3.msra.mxu1 %v395_v6  ;;  %927 = vmatprep.mubr.msk.f32.mxu0 %vm170_vm1, %v151_v12  ;;  %v384_v33 = vld [vmem:[%s1276_s1 + $0x10] sm:$0xff]  ;;  %v581_v34 = vld [vmem:[%s1276_s1 + $0x108] sm:$0xff]  ;;  %v580_v35 = vld [vmem:[%s1276_s1 + $0x100] sm:$0xff] }
  0x17   : > { %955 = vmatprep.subr.mxu1 %v394_v10  ;;  %1001 = vmatprep.subr.mxu0 %v581_v34  ;;  %v579_v36 = vld [vmem:[%s1276_s1 + $0xf8] sm:$0xff]  ;;  %v578_v37 = vld [vmem:[%s1276_s1 + $0xf0] sm:$0xff]  ;;  %v577_v38 = vld [vmem:[%s1276_s1 + $0xe8] sm:$0xff] }
  0x18   : > { %956 = vmatpush3.msra.mxu1 %v394_v10  ;;  %1002 = vmatpush3.msra.mxu0 %v581_v34  ;;  %v576_v39 = vld [vmem:[%s1276_s1 + $0xe0] sm:$0xff]  ;;  %v575_v40 = vld [vmem:[%s1276_s1 + $0xd8] sm:$0xff]  ;;  %v574_v41 = vld [vmem:[%s1276_s1 + $0xd0] sm:$0xff] }
  0x19   : > { %957 = vmatprep.subr.mxu1 %v393_v13  ;;  %928 = vmatmul.mubr.msk.f32.gmra.mxu0 %vm170_vm1, %v152_v15  ;;  %v573_v42 = vld [vmem:[%s1276_s1 + $0xc8] sm:$0xff]  ;;  %v572_v43 = vld [vmem:[%s1276_s1 + $0xc0] sm:$0xff]  ;;  %v571_v44 = vld [vmem:[%s1276_s1 + $0xb8] sm:$0xff] }
  0x1a   : > { %958 = vmatpush3.msra.mxu1 %v393_v13  ;;  %930 = vmatprep.mubr.msk.f32.mxu0 %vm170_vm1, %v153_v16  ;;  %v570_v45 = vld [vmem:[%s1276_s1 + $0xb0] sm:$0xff]  ;;  %v569_v46 = vld [vmem:[%s1276_s1 + $0xa8] sm:$0xff] }
  0x1b   : > { %959 = vmatprep.subr.mxu1 %v392_v14  ;;  %1003 = vmatprep.subr.mxu0 %v580_v35  ;;  %v813_v47 = vld [vmem:[%s1276_s1 + $0x110] ss:$0 sm:$0xff] }
  0x1c   : > { %960 = vmatpush3.msra.mxu1 %v392_v14  ;;  %1004 = vmatpush3.msra.mxu0 %v580_v35  ;;  %v566_v34 = vld [vmem:[%s1276_s1 + $0x90] sm:$0xff] }
  0x1d   : > { %961 = vmatprep.subr.mxu1 %v391_v17  ;;  %931 = vmatmul.mubr.msk.f32.gmra.mxu0 %vm170_vm1, %v154_v19  ;;  %v831_v35 = vld [vmem:[%s1276_s1 + $0x111] ss:$0 sm:$0xff] }
  0x1e   : > { %962 = vmatpush3.msra.mxu1 %v391_v17  ;;  %933 = vmatprep.mubr.msk.f32.mxu0 %vm170_vm1, %v155_v20 }
  0x1f   : > { %963 = vmatprep.subr.mxu1 %v390_v18  ;;  %1005 = vmatprep.subr.mxu0 %v579_v36 }
  0x20   : > { %964 = vmatpush3.msra.mxu1 %v390_v18  ;;  %1006 = vmatpush3.msra.mxu0 %v579_v36 }
  0x21   : > { %965 = vmatprep.subr.mxu1 %v389_v21  ;;  %934 = vmatmul.mubr.msk.f32.gmra.mxu0 %vm170_vm1, %v156_v23 }
  0x22   : > { %966 = vmatpush3.msra.mxu1 %v389_v21  ;;  %936 = vmatprep.mubr.msk.f32.mxu0 %vm170_vm1, %v157_v24 }
  0x23   : > { %967 = vmatprep.subr.mxu1 %v388_v22  ;;  %1007 = vmatprep.subr.mxu0 %v578_v37 }
  0x24   : > { %968 = vmatpush3.msra.mxu1 %v388_v22  ;;  %1008 = vmatpush3.msra.mxu0 %v578_v37 }
  0x25   : > { %937 = vmatmul.mubr.msk.f32.gmra.mxu0 %vm170_vm1, %v158_v25  ;;  %969 = vmatprep.subr.mxu1 %v387_v30 }
  0x26   : > { %939 = vmatprep.mubr.msk.f32.mxu0 %vm170_vm1, %v159_v26  ;;  %970 = vmatpush3.msra.mxu1 %v387_v30 }
  0x27   : > { %971 = vmatprep.subr.mxu1 %v386_v31  ;;  %1009 = vmatprep.subr.mxu0 %v577_v38 }
  0x28   : > { %972 = vmatpush3.msra.mxu1 %v386_v31  ;;  %1010 = vmatpush3.msra.mxu0 %v577_v38 }
  0x29   : > { %940 = vmatmul.mubr.msk.f32.gmra.mxu0 %vm170_vm1, %v160_v27  ;;  %973 = vmatprep.subr.mxu1 %v385_v32 }
  0x2a   : > { %942 = vmatprep.mubr.msk.f32.mxu0 %vm170_vm1, %v161_v28  ;;  %974 = vmatpush3.msra.mxu1 %v385_v32  ;;  %v568_v32 = vld [vmem:[%s1276_s1 + $0xa0] sm:$0xff] }
  0x2b   : > { %975 = vmatprep.subr.mxu1 %v384_v33  ;;  %1011 = vmatprep.subr.mxu0 %v576_v39 }
  0x2c   : > { %976 = vmatpush3.msra.mxu1 %v384_v33  ;;  %1012 = vmatpush3.msra.mxu0 %v576_v39  ;;  %v567_v33 = vld [vmem:[%s1276_s1 + $0x98] sm:$0xff] }
  0x2d   : > { %943 = vmatmul.mubr.msk.f32.gmra.mxu0 %vm170_vm1, %v162_v29  ;;  %1013 = vmatprep.subr.mxu0 %v575_v40 }
  0x2e   : > { %1014 = vmatpush3.msra.mxu0 %v575_v40 }
  0x2f   : > { %1015 = vmatprep.subr.mxu0 %v574_v41 }
  0x30   : > { %1016 = vmatpush3.msra.mxu0 %v574_v41 }
  0x31   : > { %1017 = vmatprep.subr.mxu0 %v573_v42 }
  0x32   : > { %1018 = vmatpush3.msra.mxu0 %v573_v42 }
  0x33   : > { %1019 = vmatprep.subr.mxu0 %v572_v43 }
  0x34   : > { %1020 = vmatpush3.msra.mxu0 %v572_v43 }
  0x35   : > { %1021 = vmatprep.subr.mxu0 %v571_v44 }
  0x36   : > { %1022 = vmatpush3.msra.mxu0 %v571_v44 }
  0x37   : > { %1023 = vmatprep.subr.mxu0 %v570_v45 }
  0x38   : > { %1024 = vmatpush3.msra.mxu0 %v570_v45 }
  0x39   : > { %1025 = vmatprep.subr.mxu0 %v569_v46 }
  0x3a   : > { %1026 = vmatpush3.msra.mxu0 %v569_v46 }
  0x3b   : > { %1027 = vmatprep.subr.mxu0 %v568_v32 }
  0x3c   : > { %1028 = vmatpush3.msra.mxu0 %v568_v32 }
  0x3d   : > { %1029 = vmatprep.subr.mxu0 %v567_v33 }
  0x3e   : > { %1030 = vmatpush3.msra.mxu0 %v567_v33 }
  0x3f   : > { %1031 = vmatprep.subr.mxu0 %v566_v34 }
  0x40   : > { %1032 = vmatpush3.msra.mxu0 %v566_v34 }
  0xd1   : > { %v923_v48 = vpop.f32.mrf.mxu0 }
  0xd2   : > { %v295_v49 = vadd.f32 %v923_v48, %v813_v47 }
  0xd3   : > { %v289_v50 = vpop.f32.mrf.mxu0 }
  0xd4   : > { %v290_v51 = vadd.f32 %v813_v47, %v289_v50  ;;  %v369_v54 = vmax.f32 %v295_v49, 0.0 }
  0xd5   : > { %v926_v52 = vpop.f32.mrf.mxu0 }
  0xd6   : > { %v368_v53 = vmax.f32 %v290_v51, 0.0  ;;  %v305_v55 = vadd.f32 %v926_v52, %v813_v47 }
  0xd7   : > { %v299_v56 = vpop.f32.mrf.mxu0 }
  0xd8   : > { %v300_v57 = vadd.f32 %v813_v47, %v299_v56  ;;  %977 = vmatprep.mubr.f32.mxu1 %v368_v53  ;;  %v371_v60 = vmax.f32 %v305_v55, 0.0 }
  0xd9   : > { %v929_v58 = vpop.f32.mrf.mxu0  ;;  %978 = vmatmul.mubr.f32.vlgmr.msra.gmra.mxu1 %v369_v54 }
  0xda   : > { %v370_v59 = vmax.f32 %v300_v57, 0.0  ;;  %v315_v61 = vadd.f32 %v929_v58, %v813_v47 }
  0xdb   : > { %v309_v62 = vpop.f32.mrf.mxu0 }
  0xdc   : > { %v310_v63 = vadd.f32 %v813_v47, %v309_v62  ;;  %980 = vmatprep.mubr.f32.mxu1 %v370_v59  ;;  %v373_v2 = vmax.f32 %v315_v61, 0.0 }
  0xdd   : > { %v932_v0 = vpop.f32.mrf.mxu0  ;;  %981 = vmatmul.mubr.f32.gmra.mxu1 %v371_v60 }
  0xde   : > { %v372_v1 = vmax.f32 %v310_v63, 0.0  ;;  %v325_v3 = vadd.f32 %v932_v0, %v813_v47 }
  0xdf   : > { %v319_v4 = vpop.f32.mrf.mxu0 }
  0xe0   : > { %v320_v5 = vadd.f32 %v813_v47, %v319_v4  ;;  %983 = vmatprep.mubr.f32.mxu1 %v372_v1  ;;  %v375_v8 = vmax.f32 %v325_v3, 0.0 }
  0xe1   : > { %v935_v6 = vpop.f32.mrf.mxu0  ;;  %984 = vmatmul.mubr.f32.gmra.mxu1 %v373_v2 }
  0xe2   : > { %v374_v7 = vmax.f32 %v320_v5, 0.0  ;;  %v335_v9 = vadd.f32 %v935_v6, %v813_v47 }
  0xe3   : > { %v329_v10 = vpop.f32.mrf.mxu0 }
  0xe4   : > { %v330_v11 = vadd.f32 %v813_v47, %v329_v10  ;;  %986 = vmatprep.mubr.f32.mxu1 %v374_v7  ;;  %v377_v14 = vmax.f32 %v335_v9, 0.0 }
  0xe5   : > { %v938_v12 = vpop.f32.mrf.mxu0  ;;  %987 = vmatmul.mubr.f32.gmra.mxu1 %v375_v8 }
  0xe6   : > { %v376_v13 = vmax.f32 %v330_v11, 0.0  ;;  %v345_v15 = vadd.f32 %v938_v12, %v813_v47 }
  0xe7   : > { %v339_v16 = vpop.f32.mrf.mxu0 }
  0xe8   : > { %v340_v17 = vadd.f32 %v813_v47, %v339_v16  ;;  %989 = vmatprep.mubr.f32.mxu1 %v376_v13  ;;  %v379_v20 = vmax.f32 %v345_v15, 0.0 }
  0xe9   : > { %v941_v18 = vpop.f32.mrf.mxu0  ;;  %990 = vmatmul.mubr.f32.gmra.mxu1 %v377_v14 }
  0xea   : > { %v378_v19 = vmax.f32 %v340_v17, 0.0  ;;  %v355_v21 = vadd.f32 %v941_v18, %v813_v47 }
  0xeb   : > { %v349_v22 = vpop.f32.mrf.mxu0 }
  0xec   : > { %v350_v23 = vadd.f32 %v813_v47, %v349_v22  ;;  %992 = vmatprep.mubr.f32.mxu1 %v378_v19  ;;  %v381_v26 = vmax.f32 %v355_v21, 0.0 }
  0xed   : > { %v944_v24 = vpop.f32.mrf.mxu0  ;;  %993 = vmatmul.mubr.f32.gmra.mxu1 %v379_v20  ;;  %v832_v20 = vld [vmem:[%s1276_s1 + $0x112] ss:$0 sm:$0xff] }
  0xee   : > { %v380_v25 = vmax.f32 %v350_v23, 0.0  ;;  %v365_v27 = vadd.f32 %v944_v24, %v813_v47 }
  0xef   : > { %v359_v28 = vpop.f32.mrf.mxu0 }
  0xf0   : > { %v360_v29 = vadd.f32 %v813_v47, %v359_v28  ;;  %995 = vmatprep.mubr.f32.mxu1 %v380_v25  ;;  %v383_v31 = vmax.f32 %v365_v27, 0.0 }
  0xf1   : > { %996 = vmatmul.mubr.f32.gmra.mxu1 %v381_v26 }
  0xf2   : > { %v382_v30 = vmax.f32 %v360_v29, 0.0 }
  0xf4   : > { %998 = vmatprep.mubr.f32.mxu1 %v382_v30 }
  0xf5   : > { %999 = vmatmul.mubr.f32.gmra.mxu1 %v383_v31 }
 0x199   : > { %v979_v36 = vpop.f32.mrf.mxu1 }
 0x19a   : > { %v477_v37 = vadd.f32 %v979_v36, %v831_v35 }
 0x19b   : > { %v471_v38 = vpop.f32.mrf.mxu1 }
 0x19c   : > { %v472_v39 = vadd.f32 %v831_v35, %v471_v38  ;;  %v551_v42 = vmax.f32 %v477_v37, 0.0 }
 0x19d   : > { %v982_v40 = vpop.f32.mrf.mxu1 }
 0x19e   : > { %v550_v41 = vmax.f32 %v472_v39, 0.0  ;;  %v487_v43 = vadd.f32 %v982_v40, %v831_v35 }
 0x19f   : > { %v481_v44 = vpop.f32.mrf.mxu1 }
 0x1a0   : > { %v482_v45 = vadd.f32 %v831_v35, %v481_v44  ;;  %1033 = vmatprep.mubr.f32.mxu0 %v550_v41  ;;  %v553_v48 = vmax.f32 %v487_v43, 0.0 }
 0x1a1   : > { %v985_v46 = vpop.f32.mrf.mxu1  ;;  %1034 = vmatmul.mubr.f32.vlgmr.msra.gmra.mxu0 %v551_v42 }
 0x1a2   : > { %v552_v47 = vmax.f32 %v482_v45, 0.0  ;;  %v497_v49 = vadd.f32 %v985_v46, %v831_v35 }
 0x1a3   : > { %v491_v50 = vpop.f32.mrf.mxu1 }
 0x1a4   : > { %v492_v51 = vadd.f32 %v831_v35, %v491_v50  ;;  %1036 = vmatprep.mubr.f32.mxu0 %v552_v47  ;;  %v555_v54 = vmax.f32 %v497_v49, 0.0 }
 0x1a5   : > { %v988_v52 = vpop.f32.mrf.mxu1  ;;  %1037 = vmatmul.mubr.f32.gmra.mxu0 %v553_v48 }
 0x1a6   : > { %v554_v53 = vmax.f32 %v492_v51, 0.0  ;;  %v507_v55 = vadd.f32 %v988_v52, %v831_v35 }
 0x1a7   : > { %v501_v56 = vpop.f32.mrf.mxu1 }
 0x1a8   : > { %v502_v57 = vadd.f32 %v831_v35, %v501_v56  ;;  %1039 = vmatprep.mubr.f32.mxu0 %v554_v53  ;;  %v557_v60 = vmax.f32 %v507_v55, 0.0 }
 0x1a9   : > { %v991_v58 = vpop.f32.mrf.mxu1  ;;  %1040 = vmatmul.mubr.f32.gmra.mxu0 %v555_v54 }
 0x1aa   : > { %v556_v59 = vmax.f32 %v502_v57, 0.0  ;;  %v517_v61 = vadd.f32 %v991_v58, %v831_v35 }
 0x1ab   : > { %v511_v62 = vpop.f32.mrf.mxu1 }
 0x1ac   : > { %v512_v63 = vadd.f32 %v831_v35, %v511_v62  ;;  %1042 = vmatprep.mubr.f32.mxu0 %v556_v59  ;;  %v559_v2 = vmax.f32 %v517_v61, 0.0 }
 0x1ad   : > { %v994_v0 = vpop.f32.mrf.mxu1  ;;  %1043 = vmatmul.mubr.f32.gmra.mxu0 %v557_v60 }
 0x1ae   : > { %v558_v1 = vmax.f32 %v512_v63, 0.0  ;;  %v527_v3 = vadd.f32 %v994_v0, %v831_v35 }
 0x1af   : > { %v521_v4 = vpop.f32.mrf.mxu1 }
 0x1b0   : > { %v522_v5 = vadd.f32 %v831_v35, %v521_v4  ;;  %1045 = vmatprep.mubr.f32.mxu0 %v558_v1  ;;  %v561_v8 = vmax.f32 %v527_v3, 0.0 }
 0x1b1   : > { %v997_v6 = vpop.f32.mrf.mxu1  ;;  %1046 = vmatmul.mubr.f32.gmra.mxu0 %v559_v2 }
 0x1b2   : > { %v560_v7 = vmax.f32 %v522_v5, 0.0  ;;  %v537_v9 = vadd.f32 %v997_v6, %v831_v35 }
 0x1b3   : > { %v531_v10 = vpop.f32.mrf.mxu1 }
 0x1b4   : > { %v532_v11 = vadd.f32 %v831_v35, %v531_v10  ;;  %1048 = vmatprep.mubr.f32.mxu0 %v560_v7  ;;  %v563_v14 = vmax.f32 %v537_v9, 0.0 }
 0x1b5   : > { %v1000_v12 = vpop.f32.mrf.mxu1  ;;  %1049 = vmatmul.mubr.f32.gmra.mxu0 %v561_v8 }
 0x1b6   : > { %v562_v13 = vmax.f32 %v532_v11, 0.0  ;;  %v547_v15 = vadd.f32 %v1000_v12, %v831_v35 }
 0x1b7   : > { %v541_v16 = vpop.f32.mrf.mxu1 }
 0x1b8   : > { %v542_v17 = vadd.f32 %v831_v35, %v541_v16  ;;  %1051 = vmatprep.mubr.f32.mxu0 %v562_v13  ;;  %v565_v19 = vmax.f32 %v547_v15, 0.0 }
 0x1b9   : > { %1052 = vmatmul.mubr.f32.gmra.mxu0 %v563_v14 }
 0x1ba   : > { %v564_v18 = vmax.f32 %v542_v17, 0.0 }
 0x1bc   : > { %1054 = vmatprep.mubr.f32.mxu0 %v564_v18 }
 0x1bd   : > { %1055 = vmatmul.mubr.f32.gmra.mxu0 %v565_v19 }
 0x261   : > { %v1035_v21 = vpop.f32.mrf.mxu0 }
 0x262   : > { %v659_v22 = vadd.f32 %v1035_v21, %v832_v20 }
 0x263   : > { %v653_v23 = vpop.f32.mrf.mxu0 }
 0x264   : > { %733 = vst [vmem:[%s1254_s16 + $0x8] sm:$0xff] %v659_v22  ;;  %v654_v24 = vadd.f32 %v832_v20, %v653_v23 }
 0x265   : > { %v1038_v25 = vpop.f32.mrf.mxu0 }
 0x266   : > { %732 = vst [vmem:[%s1254_s16] sm:$0xff] %v654_v24  ;;  %v669_v26 = vadd.f32 %v1038_v25, %v832_v20 }
 0x267   : > { %v663_v27 = vpop.f32.mrf.mxu0 }
 0x268   : > { %735 = vst [vmem:[%s1254_s16 + $0x18] sm:$0xff] %v669_v26  ;;  %v664_v28 = vadd.f32 %v832_v20, %v663_v27 }
 0x269   : > { %v1041_v29 = vpop.f32.mrf.mxu0 }
 0x26a   : > { %734 = vst [vmem:[%s1254_s16 + $0x10] sm:$0xff] %v664_v28  ;;  %v679_v30 = vadd.f32 %v1041_v29, %v832_v20 }
 0x26b   : > { %v673_v31 = vpop.f32.mrf.mxu0 }
 0x26c   : > { %737 = vst [vmem:[%s1254_s16 + $0x28] sm:$0xff] %v679_v30  ;;  %v674_v32 = vadd.f32 %v832_v20, %v673_v31 }
 0x26d   : > { %v1044_v33 = vpop.f32.mrf.mxu0 }
 0x26e   : > { %736 = vst [vmem:[%s1254_s16 + $0x20] sm:$0xff] %v674_v32  ;;  %v689_v34 = vadd.f32 %v1044_v33, %v832_v20 }
 0x26f   : > { %v683_v35 = vpop.f32.mrf.mxu0 }
 0x270   : > { %739 = vst [vmem:[%s1254_s16 + $0x38] sm:$0xff] %v689_v34  ;;  %v684_v36 = vadd.f32 %v832_v20, %v683_v35 }
 0x271   : > { %v1047_v37 = vpop.f32.mrf.mxu0 }
 0x272   : > { %738 = vst [vmem:[%s1254_s16 + $0x30] sm:$0xff] %v684_v36  ;;  %v699_v38 = vadd.f32 %v1047_v37, %v832_v20 }
 0x273   : > { %v693_v39 = vpop.f32.mrf.mxu0 }
 0x274   : > { %741 = vst [vmem:[%s1254_s16 + $0x48] sm:$0xff] %v699_v38  ;;  %v694_v40 = vadd.f32 %v832_v20, %v693_v39 }
 0x275   : > { %v1050_v41 = vpop.f32.mrf.mxu0 }
 0x276   : > { %740 = vst [vmem:[%s1254_s16 + $0x40] sm:$0xff] %v694_v40  ;;  %v709_v42 = vadd.f32 %v1050_v41, %v832_v20 }
 0x277   : > { %v703_v43 = vpop.f32.mrf.mxu0 }
 0x278   : > { %743 = vst [vmem:[%s1254_s16 + $0x58] sm:$0xff] %v709_v42  ;;  %v704_v44 = vadd.f32 %v832_v20, %v703_v43 }
 0x279   : > { %v1053_v45 = vpop.f32.mrf.mxu0 }
 0x27a   : > { %742 = vst [vmem:[%s1254_s16 + $0x50] sm:$0xff] %v704_v44  ;;  %v719_v46 = vadd.f32 %v1053_v45, %v832_v20 }
 0x27b   : > { %v713_v47 = vpop.f32.mrf.mxu0 }
 0x27c   : > { %745 = vst [vmem:[%s1254_s16 + $0x68] sm:$0xff] %v719_v46  ;;  %v714_v48 = vadd.f32 %v832_v20, %v713_v47 }
 0x27d   : > { %v1056_v49 = vpop.f32.mrf.mxu0 }
 0x27e   : > { %744 = vst [vmem:[%s1254_s16 + $0x60] sm:$0xff] %v714_v48  ;;  %v729_v50 = vadd.f32 %v1056_v49, %v832_v20 }
 0x27f   : > { %v723_v51 = vpop.f32.mrf.mxu0 }
 0x280   : > { %747 = vst [vmem:[%s1254_s16 + $0x78] sm:$0xff] %v729_v50  ;;  %v724_v52 = vadd.f32 %v832_v20, %v723_v51 }
 0x282   : > { %746 = vst [vmem:[%s1254_s16 + $0x70] sm:$0xff] %v724_v52 }
 0x283 PF: > { %s12_s9 = sadd.s32 1, %s1071_s9  }
 0x284   : > { %p9_p4 = scmp.ge.s32.totalorder %s12_s9, 4  }
 0x286   :  { %11 = sbr.rel (!%p9_p4) target bundleno = 1 (0x1), region = 58 }

</bundles_post_ra>
